<compile_context>
chip_gen: v7x
topology: tpu7x:2x2x1
jax: 0.10.0
libtpu: 0.0.40
codegen_flags: <defaults>
</compile_context>

<pallas_src>
import jax
import jax.numpy as jnp
from jax.experimental import pallas as pl
from jax.experimental.pallas import tpu as pltpu

IN_F = 28 * 28   # 784
H1 = 256
H2 = 64
OUT_F = 10


def _round_up(x, m):
    return (x + m - 1) // m * m


def mlp_kernel(x_ref, w1_ref, b1_ref, w2_ref, b2_ref, w3_ref, b3_ref, o_ref):
    # Layer 1: (TB, 784)f32 -> bf16 in-kernel, @ (784, 256)bf16 -> f32 acc, +b1, relu
    x = x_ref[...].astype(jnp.bfloat16)
    h1 = jnp.dot(x, w1_ref[...], preferred_element_type=jnp.float32)
    h1 = jnp.maximum(h1 + b1_ref[...], 0.0)
    # Layer 2: (TB, 256)bf16 @ (256, 64)bf16 -> f32 acc, +b2, relu
    h2 = jnp.dot(h1.astype(jnp.bfloat16), w2_ref[...],
                 preferred_element_type=jnp.float32)
    h2 = jnp.maximum(h2 + b2_ref[...], 0.0)
    # Layer 3: (TB, 64)bf16 @ (64, 10)bf16 -> f32 acc, +b3 (no activation)
    out = jnp.dot(h2.astype(jnp.bfloat16), w3_ref[...],
                  preferred_element_type=jnp.float32)
    o_ref[...] = (out + b3_ref[...]).astype(o_ref.dtype)


def _pick_batch_tile(B):
    """Per-generation batch tile (multiple of 8, VMEM-budget aware)."""
    kind = jax.devices()[0].device_kind.lower()
    if ("v6" in kind) or ("v7" in kind):
        tb_max = 2048          # ~14 MB live VMEM at TB=2048 < 32 MiB default scoped
    else:
        tb_max = 1024          # v5e & older: 16 MiB default scoped VMEM
    tb = min(tb_max, _round_up(max(B, 1), 8))
    if "v7" in kind and B > 512:
        # Megacore: keep >= 2 grid steps so ("parallel",) can split across both TCs.
        half = _round_up(-(-B // 2), 256)
        tb = min(tb, max(half, 8))
    return tb


def mlp_forward(x, w1, b1, w2, b2, w3, b3):
    """x: (B, 784) f32; weights stored as (in, out); returns (B, 10) f32."""
    B = x.shape[0]
    TB = _pick_batch_tile(B)
    B_pad = _round_up(B, TB)

    # x goes in untouched (f32, unpadded K). Only pad rows if B isn't a tile multiple.
    x_in = x if B_pad == B else jnp.zeros((B_pad, IN_F), x.dtype).at[:B].set(x)

    # Weights: cast once to bf16 (MXU input dtype); biases stay f32. No padding.
    w1_b = w1.astype(jnp.bfloat16)
    w2_b = w2.astype(jnp.bfloat16)
    w3_b = w3.astype(jnp.bfloat16)
    b1_r = b1.reshape(1, H1).astype(jnp.float32)
    b2_r = b2.reshape(1, H2).astype(jnp.float32)
    b3_r = b3.reshape(1, OUT_F).astype(jnp.float32)

    grid = (B_pad // TB,)
    const = lambda i: (0, 0)   # weights/biases: same block every step -> VMEM-resident

    flops = 2 * B_pad * (IN_F * H1 + H1 * H2 + H2 * OUT_F)
    bytes_accessed = (B_pad * IN_F * 4                       # x read (f32)
                      + (w1_b.size + w2_b.size + w3_b.size) * 2
                      + (b1_r.size + b2_r.size + b3_r.size) * 4
                      + B_pad * OUT_F * 4)                   # output write (f32)

    out = pl.pallas_call(
        mlp_kernel,
        grid=grid,
        in_specs=[
            pl.BlockSpec((TB, IN_F), lambda i: (i, 0)),   # x tile (double-buffered)
            pl.BlockSpec((IN_F, H1), const),              # w1
            pl.BlockSpec((1, H1), const),                 # b1
            pl.BlockSpec((H1, H2), const),                # w2
            pl.BlockSpec((1, H2), const),                 # b2
            pl.BlockSpec((H2, OUT_F), const),             # w3
            pl.BlockSpec((1, OUT_F), const),              # b3
        ],
        out_specs=pl.BlockSpec((TB, OUT_F), lambda i: (i, 0)),
        out_shape=jax.ShapeDtypeStruct((B_pad, OUT_F), jnp.float32),
        compiler_params=pltpu.CompilerParams(
            dimension_semantics=("parallel",)),
        cost_estimate=pl.CostEstimate(
            flops=flops, transcendentals=0, bytes_accessed=bytes_accessed),
    )(x_in, w1_b, b1_r, w2_b, b2_r, w3_b, b3_r)

    return out if B_pad == B else out[:B]


def init_params(key):
    # Deterministic init mimicking nn.Linear's uniform(-1/sqrt(fan_in), 1/sqrt(fan_in)).
    dims = [(IN_F, H1), (H1, H2), (H2, OUT_F)]
    params = []
    for fan_in, fan_out in dims:
        kw, kb, key = jax.random.split(key, 3)
        bound = 1.0 / jnp.sqrt(fan_in)
        w = jax.random.uniform(kw, (fan_in, fan_out), jnp.float32, -bound, bound)
        b = jax.random.uniform(kb, (fan_out,), jnp.float32, -bound, bound)
        params.extend([w, b])
    return params


def reference_forward_f32(x, w1, b1, w2, b2, w3, b3):
    h1 = jnp.maximum(x @ w1 + b1, 0.0)
    h2 = jnp.maximum(h1 @ w2 + b2, 0.0)
    return h2 @ w3 + b3


if __name__ == "__main__":
    key = jax.random.PRNGKey(0)
    kx, kp = jax.random.split(key)

    B = 8  # small batch for the smoke test
    x = jax.random.normal(kx, (B, IN_F), jnp.float32)
    w1, b1, w2, b2, w3, b3 = init_params(kp)

    out = mlp_forward(x, w1, b1, w2, b2, w3, b3)
    out = jax.block_until_ready(out)

    ref = reference_forward_f32(x, w1, b1, w2, b2, w3, b3)
    assert out.shape == (B, OUT_F), out.shape
    # bf16 MXU inputs with f32 accumulation -> relaxed tolerance vs pure-f32 reference.
    assert jnp.allclose(out, ref, atol=3e-2, rtol=3e-2), "mismatch vs reference"

    print("KERNEL_OK")
</pallas_src>

<mosaic_0001>
module attributes {stable_mosaic.version = 11 : i64} {
  func.func @mlp_kernel(%arg0: i32, %arg1: memref<8x784xf32, #tpu.memory_space<vmem>>, %arg2: memref<784x256xbf16, #tpu.memory_space<vmem>>, %arg3: memref<1x256xf32, #tpu.memory_space<vmem>>, %arg4: memref<256x64xbf16, #tpu.memory_space<vmem>>, %arg5: memref<1x64xf32, #tpu.memory_space<vmem>>, %arg6: memref<64x10xbf16, #tpu.memory_space<vmem>>, %arg7: memref<1x10xf32, #tpu.memory_space<vmem>>, %arg8: memref<8x10xf32, #tpu.memory_space<vmem>>) attributes {dimension_semantics = [#tpu.dimension_semantics<parallel>], iteration_bounds = array<i64: 1>, scalar_prefetch = 0 : i64, scratch_operands = 0 : i64, tpu.core_type = #tpu.core_type<tc>, window_params = [{transform_indices = @transform_0, window_bounds = array<i64: 8, 784>}, {pipeline_mode = #tpu.pipeline_mode<synchronous>, transform_indices = @transform_1, window_bounds = array<i64: 784, 256>}, {pipeline_mode = #tpu.pipeline_mode<synchronous>, transform_indices = @transform_2, window_bounds = array<i64: 1, 256>}, {pipeline_mode = #tpu.pipeline_mode<synchronous>, transform_indices = @transform_3, window_bounds = array<i64: 256, 64>}, {pipeline_mode = #tpu.pipeline_mode<synchronous>, transform_indices = @transform_4, window_bounds = array<i64: 1, 64>}, {pipeline_mode = #tpu.pipeline_mode<synchronous>, transform_indices = @transform_5, window_bounds = array<i64: 64, 10>}, {pipeline_mode = #tpu.pipeline_mode<synchronous>, transform_indices = @transform_6, window_bounds = array<i64: 1, 10>}, {transform_indices = @transform_7, window_bounds = array<i64: 8, 10>}]} {
    %c0 = arith.constant 0 : index
    %c0_0 = arith.constant 0 : index
    %0 = vector.load %arg1[%c0, %c0_0] : memref<8x784xf32, #tpu.memory_space<vmem>>, vector<8x784xf32>
    %1 = arith.truncf %0 : vector<8x784xf32> to vector<8x784xbf16>
    %c0_1 = arith.constant 0 : index
    %c0_2 = arith.constant 0 : index
    %2 = vector.load %arg2[%c0_1, %c0_2] : memref<784x256xbf16, #tpu.memory_space<vmem>>, vector<784x256xbf16>
    %cst = arith.constant dense<0.000000e+00> : vector<8x256xf32>
    %3 = tpu.matmul %1, %2, %cst {dimension_numbers = #tpu.dot_dimension_numbers<[1], [0], [0], [1], [0, 0, 1, 1], [], []>} : vector<8x784xbf16>, vector<784x256xbf16>, vector<8x256xf32> -> vector<8x256xf32>
    %c0_3 = arith.constant 0 : index
    %c0_4 = arith.constant 0 : index
    %4 = vector.load %arg3[%c0_3, %c0_4] : memref<1x256xf32, #tpu.memory_space<vmem>>, vector<1x256xf32>
    %5 = vector.broadcast %4 : vector<1x256xf32> to vector<8x256xf32>
    %6 = arith.addf %3, %5 : vector<8x256xf32>
    %cst_5 = arith.constant 0.000000e+00 : f32
    %7 = vector.broadcast %cst_5 : f32 to vector<8x256xf32>
    %8 = arith.maximumf %6, %7 : vector<8x256xf32>
    %9 = arith.truncf %8 : vector<8x256xf32> to vector<8x256xbf16>
    %c0_6 = arith.constant 0 : index
    %c0_7 = arith.constant 0 : index
    %10 = vector.load %arg4[%c0_6, %c0_7] : memref<256x64xbf16, #tpu.memory_space<vmem>>, vector<256x64xbf16>
    %cst_8 = arith.constant dense<0.000000e+00> : vector<8x64xf32>
    %11 = tpu.matmul %9, %10, %cst_8 {dimension_numbers = #tpu.dot_dimension_numbers<[1], [0], [0], [1], [0, 0, 1, 1], [], []>} : vector<8x256xbf16>, vector<256x64xbf16>, vector<8x64xf32> -> vector<8x64xf32>
    %c0_9 = arith.constant 0 : index
    %c0_10 = arith.constant 0 : index
    %12 = vector.load %arg5[%c0_9, %c0_10] : memref<1x64xf32, #tpu.memory_space<vmem>>, vector<1x64xf32>
    %13 = vector.broadcast %12 : vector<1x64xf32> to vector<8x64xf32>
    %14 = arith.addf %11, %13 : vector<8x64xf32>
    %cst_11 = arith.constant 0.000000e+00 : f32
    %15 = vector.broadcast %cst_11 : f32 to vector<8x64xf32>
    %16 = arith.maximumf %14, %15 : vector<8x64xf32>
    %17 = arith.truncf %16 : vector<8x64xf32> to vector<8x64xbf16>
    %c0_12 = arith.constant 0 : index
    %c0_13 = arith.constant 0 : index
    %18 = vector.load %arg6[%c0_12, %c0_13] : memref<64x10xbf16, #tpu.memory_space<vmem>>, vector<64x10xbf16>
    %cst_14 = arith.constant dense<0.000000e+00> : vector<8x10xf32>
    %19 = tpu.matmul %17, %18, %cst_14 {dimension_numbers = #tpu.dot_dimension_numbers<[1], [0], [0], [1], [0, 0, 1, 1], [], []>} : vector<8x64xbf16>, vector<64x10xbf16>, vector<8x10xf32> -> vector<8x10xf32>
    %c0_15 = arith.constant 0 : index
    %c0_16 = arith.constant 0 : index
    %20 = vector.load %arg7[%c0_15, %c0_16] : memref<1x10xf32, #tpu.memory_space<vmem>>, vector<1x10xf32>
    %21 = vector.broadcast %20 : vector<1x10xf32> to vector<8x10xf32>
    %22 = arith.addf %19, %21 : vector<8x10xf32>
    %c0_17 = arith.constant 0 : index
    %c0_18 = arith.constant 0 : index
    %23 = vector.load %arg8[%c0_17, %c0_18] : memref<8x10xf32, #tpu.memory_space<vmem>>, vector<8x10xf32>
    tpu.vector_store %arg8[%c0_17, %c0_18], %22 {strides = array<i32>} : memref<8x10xf32, #tpu.memory_space<vmem>>, vector<8x10xf32>,
    return
  }
  func.func @transform_0(%arg0: i32) -> (i32, i32) {
    %c0_i32 = arith.constant 0 : i32
    %c0_i32_0 = arith.constant 0 : i32
    return %arg0, %c0_i32 : i32, i32
  }
  func.func @transform_1(%arg0: i32) -> (i32, i32) {
    %c0_i32 = arith.constant 0 : i32
    %c0_i32_0 = arith.constant 0 : i32
    %c0_i32_1 = arith.constant 0 : i32
    return %c0_i32, %c0_i32_0 : i32, i32
  }
  func.func @transform_2(%arg0: i32) -> (i32, i32) {
    %c0_i32 = arith.constant 0 : i32
    %c0_i32_0 = arith.constant 0 : i32
    %c0_i32_1 = arith.constant 0 : i32
    return %c0_i32, %c0_i32_0 : i32, i32
  }
  func.func @transform_3(%arg0: i32) -> (i32, i32) {
    %c0_i32 = arith.constant 0 : i32
    %c0_i32_0 = arith.constant 0 : i32
    %c0_i32_1 = arith.constant 0 : i32
    return %c0_i32, %c0_i32_0 : i32, i32
  }
  func.func @transform_4(%arg0: i32) -> (i32, i32) {
    %c0_i32 = arith.constant 0 : i32
    %c0_i32_0 = arith.constant 0 : i32
    %c0_i32_1 = arith.constant 0 : i32
    return %c0_i32, %c0_i32_0 : i32, i32
  }
  func.func @transform_5(%arg0: i32) -> (i32, i32) {
    %c0_i32 = arith.constant 0 : i32
    %c0_i32_0 = arith.constant 0 : i32
    %c0_i32_1 = arith.constant 0 : i32
    return %c0_i32, %c0_i32_0 : i32, i32
  }
  func.func @transform_6(%arg0: i32) -> (i32, i32) {
    %c0_i32 = arith.constant 0 : i32
    %c0_i32_0 = arith.constant 0 : i32
    %c0_i32_1 = arith.constant 0 : i32
    return %c0_i32, %c0_i32_0 : i32, i32
  }
  func.func @transform_7(%arg0: i32) -> (i32, i32) {
    %c0_i32 = arith.constant 0 : i32
    %c0_i32_0 = arith.constant 0 : i32
    return %arg0, %c0_i32 : i32, i32
  }
}

</mosaic_0001>

<bundles_post_ra>
// kernel: tpu_custom_call.1
= control target key start
LH: loop header
LB: loop body
LE: loop exit
PB: predicated region body
PF: predicated region fallthrough
CT: control target
= control target key end

     0   :  { %12 = vsyncpa [#allocation3], 0  ;;  %s1659_s0 = inlined_call_operand.vmem [shape: f32[8,784], index: 0, kind: input, shape index: {}]   ;;  %s1660_s1 = inlined_call_operand.hbm [shape: bf16[784,256], index: 1, kind: input, shape index: {}]   ;;  %s1661_s2 = inlined_call_operand.vmem [shape: f32[1,256], index: 2, kind: input, shape index: {}]   ;;  %s1662_s3 = inlined_call_operand.vmem [shape: bf16[256,64], index: 3, kind: input, shape index: {}]   ;;  %s1663_s4 = inlined_call_operand.vmem [shape: f32[1,64], index: 4, kind: input, shape index: {}]   ;;  %s1664_s5 = inlined_call_operand.vmem [shape: bf16[64,10], index: 5, kind: input, shape index: {}]   ;;  %s1665_s6 = inlined_call_operand.vmem [shape: f32[1,10], index: 6, kind: input, shape index: {}]   ;;  %s1666_s7 = inlined_call_operand.hbm [shape: f32[8,10], index: 7, kind: output, shape index: {}]  }
   0x1   :  { %13 = vsyncpa [#allocation4], 0  ;;  %s1498_s24 = smov [#allocation2]   ;;  %s1450_s28 = scalar_lea.hbm %s1660_s1, 12544 }
   0x2   :  { %s21_s25 = sshll.u32 %s1498_s24, 4  ;;  %p1451_p0 = scmp.ne.s32.totalorder %s1660_s1, %s1450_s28  ;;  %s22_s25 = int_to_ptr.vmem [resolvable:$true] %s21_s25 }
   0x3   :  { %p1454_p1 = scmp.lt.u32.totalorder %s1450_s28, %s1660_s1 }
   0x5   :  { %p1456_p2 = pnand %p1454_p1, %p1451_p0 }
   0x7   :  { %1459 = shalt.err (!%p1456_p2)
}
   0x8   :  { %s1460_s10 = scalar_lea.vmem %s22_s25, 12544  ;;  %p1465_p4 = scmp.lt.s32.totalorder %s22_s25, %s22_s25 }
   0x9   :  { %p1461_p3 = scmp.ne.s32.totalorder %s22_s25, %s1460_s10  ;;  %p1466_p5 = scmp.lt.s32.totalorder %s1460_s10, %s1460_s10 }
   0xb   :  { %p1467_p6 = por %p1466_p5, %p1465_p4 }
   0xd   :  { %p1468_p7 = pnand %p1467_p6, %p1461_p3 }
   0xf   :  { %1471 = shalt.err (!%p1468_p7)
}
  0x10   :  { %s1499_s11 = smov 128   ;;  %s1500_s12 = smov 8  }
  0x11   :  { %27 = dma.hbm_to_vmem [thread:$0]  %s1660_s1, 12544, %s22_s25, [#allocation3], %s1499_s11, %s1499_s11, %s1500_s12  }
  0x12   :  { %1494 = dma.done.wait [#allocation3], 12544  }
  0x13   :  { %1495 = vsyncadd [#allocation3], 4294954752  ;;  %v1283_v0 = vld [vmem:[#allocation2 + $0x104] ss:$8 sps:$4 sm:$0xff]   ;;  %v1285_v1 = vld [vmem:[#allocation2 + $0x100] ss:$8 sps:$4 sm:$0xff]  }
  0x14   :  { %701 = vmatprep.subr.bf16.mxu0 %v1283_v0  ;;  %v1286_v2 = vld [vmem:[#allocation2 + $0x114] ss:$8 sps:$4 sm:$0xff]   ;;  %v1288_v3 = vld [vmem:[#allocation2 + $0x110] ss:$8 sps:$4 sm:$0xff]   ;;  %v1289_v4 = vld [vmem:[#allocation2 + $0x124] ss:$8 sps:$4 sm:$0xff]  }
  0x15   :  { %702 = vmatpush1.bf16.msra.mxu0 %v1285_v1  ;;  %v1291_v5 = vld [vmem:[#allocation2 + $0x120] ss:$8 sps:$4 sm:$0xff]   ;;  %v1292_v6 = vld [vmem:[#allocation2 + $0x134] ss:$8 sps:$4 sm:$0xff]   ;;  %v1294_v7 = vld [vmem:[#allocation2 + $0x130] ss:$8 sps:$4 sm:$0xff]  }
  0x16   :  { %703 = vmatprep.subr.bf16.mxu0 %v1286_v2  ;;  %v1295_v8 = vld [vmem:[#allocation2 + $0x144] ss:$8 sps:$4 sm:$0xff]   ;;  %v1297_v9 = vld [vmem:[#allocation2 + $0x140] ss:$8 sps:$4 sm:$0xff]   ;;  %v1298_v10 = vld [vmem:[#allocation2 + $0x154] ss:$8 sps:$4 sm:$0xff]  }
  0x17   :  { %v1300_v11 = vld [vmem:[#allocation2 + $0x150] ss:$8 sps:$4 sm:$0xff]   ;;  %v1325_v12 = vld [vmem:[#allocation2 + $0x4] ss:$8 sps:$4 sm:$0xff]   ;;  %v1327_v13 = vld [vmem:[#allocation2] ss:$8 sps:$4 sm:$0xff]  }
  0x18   :  { %v1301_v14 = vld [vmem:[#allocation2 + $0x164] ss:$8 sps:$4 sm:$0xff]   ;;  %660 = vmatprep.subr.bf16.mxu1 %v1325_v12  ;;  %v1331_v15 = vld [vmem:[#allocation2 + $0x14] ss:$8 sps:$4 sm:$0xff]   ;;  %v1333_v16 = vld [vmem:[#allocation2 + $0x10] ss:$8 sps:$4 sm:$0xff]  }
  0x19   :  { %704 = vmatpush1.bf16.msra.mxu0 %v1288_v3  ;;  %661 = vmatpush1.bf16.msra.mxu1 %v1327_v13  ;;  %v1303_v17 = vld [vmem:[#allocation2 + $0x160] ss:$8 sps:$4 sm:$0xff]   ;;  %v1304_v18 = vld [vmem:[#allocation2 + $0x174] ss:$8 sps:$4 sm:$0xff]   ;;  %v1337_v19 = vld [vmem:[#allocation2 + $0x24] ss:$8 sps:$4 sm:$0xff]  }
  0x1a   :  { %705 = vmatprep.subr.bf16.mxu0 %v1289_v4  ;;  %662 = vmatprep.subr.bf16.mxu1 %v1331_v15  ;;  %v45_v20 = vld [vmem:[%s1659_s0 + $0x18] sm:$0xff]  ;;  %v1339_v21 = vld [vmem:[#allocation2 + $0x20] ss:$8 sps:$4 sm:$0xff]   ;;  %v1307_v24 = vld [vmem:[#allocation2 + $0x184] ss:$8 sps:$4 sm:$0xff]   ;;  %vm656_vm0 = vcmask 130048  }
  0x1b   :  { %v52_v22 = vpack.c.bf16 %v45_v20, %v45_v20  ;;  %v1306_v23 = vld [vmem:[#allocation2 + $0x170] ss:$8 sps:$4 sm:$0xff]   ;;  %v1343_v25 = vld [vmem:[#allocation2 + $0x34] ss:$8 sps:$4 sm:$0xff]   ;;  %v1309_v26 = vld [vmem:[#allocation2 + $0x180] ss:$8 sps:$4 sm:$0xff]  }
  0x1c   :  { %v1345_v27 = vld [vmem:[#allocation2 + $0x30] ss:$8 sps:$4 sm:$0xff]   ;;  %v1349_v28 = vld [vmem:[#allocation2 + $0x44] ss:$8 sps:$4 sm:$0xff]   ;;  %v1310_v29 = vld [vmem:[#allocation2 + $0x194] ss:$8 sps:$4 sm:$0xff]  }
  0x1d   :  { %706 = vmatpush1.bf16.msra.mxu0 %v1291_v5  ;;  %663 = vmatpush1.bf16.msra.mxu1 %v1333_v16  ;;  %v1312_v30 = vld [vmem:[#allocation2 + $0x190] ss:$8 sps:$4 sm:$0xff]   ;;  %v1351_v31 = vld [vmem:[#allocation2 + $0x40] ss:$8 sps:$4 sm:$0xff]   ;;  %v1355_v32 = vld [vmem:[#allocation2 + $0x54] ss:$8 sps:$4 sm:$0xff]  }
  0x1e   :  { %707 = vmatprep.subr.bf16.mxu0 %v1292_v6  ;;  %664 = vmatprep.subr.bf16.mxu1 %v1337_v19  ;;  %v1313_v33 = vld [vmem:[#allocation2 + $0x1a4] ss:$8 sps:$4 sm:$0xff]   ;;  %v1315_v34 = vld [vmem:[#allocation2 + $0x1a0] ss:$8 sps:$4 sm:$0xff]   ;;  %v1357_v35 = vld [vmem:[#allocation2 + $0x50] ss:$8 sps:$4 sm:$0xff]  }
  0x1f   :  { %733 = vmatprep.mubr.bf16.mxu0 %v52_v22  ;;  %v1361_v36 = vld [vmem:[#allocation2 + $0x64] ss:$8 sps:$4 sm:$0xff]   ;;  %v1316_v37 = vld [vmem:[#allocation2 + $0x1b4] ss:$8 sps:$4 sm:$0xff]   ;;  %v1318_v38 = vld [vmem:[#allocation2 + $0x1b0] ss:$8 sps:$4 sm:$0xff]  }
  0x20   :  { %v1363_v39 = vld [vmem:[#allocation2 + $0x60] ss:$8 sps:$4 sm:$0xff]   ;;  %v1367_v40 = vld [vmem:[#allocation2 + $0x74] ss:$8 sps:$4 sm:$0xff]   ;;  %v1319_v41 = vld [vmem:[#allocation2 + $0x1c4] ss:$8 sps:$4 sm:$0xff]  }
  0x21   :  { %708 = vmatpush1.bf16.msra.mxu0 %v1294_v7  ;;  %665 = vmatpush1.bf16.msra.mxu1 %v1339_v21  ;;  %v1321_v42 = vld [vmem:[#allocation2 + $0x1c0] ss:$8 sps:$4 sm:$0xff]   ;;  %v1369_v43 = vld [vmem:[#allocation2 + $0x70] ss:$8 sps:$4 sm:$0xff]   ;;  %v1373_v44 = vld [vmem:[#allocation2 + $0x84] ss:$8 sps:$4 sm:$0xff]  }
  0x22   :  { %709 = vmatprep.subr.bf16.mxu0 %v1295_v8  ;;  %666 = vmatprep.subr.bf16.mxu1 %v1343_v25  ;;  %v1322_v45 = vld [vmem:[#allocation2 + $0x1d4] ss:$8 sps:$4 sm:$0xff]   ;;  %v1324_v46 = vld [vmem:[#allocation2 + $0x1d0] ss:$8 sps:$4 sm:$0xff]   ;;  %v1375_v47 = vld [vmem:[#allocation2 + $0x80] ss:$8 sps:$4 sm:$0xff]  }
  0x23   :  { %v1379_v48 = vld [vmem:[#allocation2 + $0x94] ss:$8 sps:$4 sm:$0xff]   ;;  %v1328_v49 = vld [vmem:[#allocation2 + $0x1e4] ss:$8 sps:$4 sm:$0xff]   ;;  %v1330_v50 = vld [vmem:[#allocation2 + $0x1e0] ss:$8 sps:$4 sm:$0xff]  }
  0x24   :  { %v1381_v51 = vld [vmem:[#allocation2 + $0x90] ss:$8 sps:$4 sm:$0xff]   ;;  %v1385_v52 = vld [vmem:[#allocation2 + $0xa4] ss:$8 sps:$4 sm:$0xff]   ;;  %v1334_v53 = vld [vmem:[#allocation2 + $0x1f4] ss:$8 sps:$4 sm:$0xff]  }
  0x25   :  { %710 = vmatpush1.bf16.msra.mxu0 %v1297_v9  ;;  %667 = vmatpush1.bf16.msra.mxu1 %v1345_v27  ;;  %v1336_v54 = vld [vmem:[#allocation2 + $0x1f0] ss:$8 sps:$4 sm:$0xff]   ;;  %v1387_v56 = vld [vmem:[#allocation2 + $0xa0] ss:$8 sps:$4 sm:$0xff]   ;;  %v1391_v57 = vld [vmem:[#allocation2 + $0xb4] ss:$8 sps:$4 sm:$0xff]  }
  0x26   :  { %711 = vmatprep.subr.bf16.mxu0 %v1298_v10  ;;  %668 = vmatprep.subr.bf16.mxu1 %v1349_v28  ;;  %v44_v55 = vld [vmem:[%s1659_s0 + $0x10] sm:$0xff]  ;;  %v1342_v58 = vld [vmem:[#allocation2 + $0x204] ss:$8 sps:$4 sm:$0xff]   ;;  %v1340_v62 = vld [vmem:[#allocation2 + $0x200] ss:$8 sps:$4 sm:$0xff]   ;;  %vm1503_vm1 = vmmov 0  }
  0x27   :  { %v51_v59 = vpack.c.bf16 %v44_v55, %v44_v55  ;;  %v1393_v60 = vld [vmem:[#allocation2 + $0xb0] ss:$8 sps:$4 sm:$0xff]   ;;  %v43_v61 = vld [vmem:[%s1659_s0 + $0x8] sm:$0xff]  ;;  %v1348_v1 = vld [vmem:[#allocation2 + $0x214] ss:$8 sps:$4 sm:$0xff]   ;;  %vm1044_vm2 = vcmask 523264  }
  0x28   :  { %v1397_v63 = vld [vmem:[#allocation2 + $0xc4] ss:$8 sps:$4 sm:$0xff]   ;;  %v50_v0 = vpack.c.bf16 %v43_v61, %v43_v61  ;;  %v1399_v2 = vld [vmem:[#allocation2 + $0xc0] ss:$8 sps:$4 sm:$0xff]   ;;  %v1346_v4 = vld [vmem:[#allocation2 + $0x210] ss:$8 sps:$4 sm:$0xff]  }
  0x29   :  { %712 = vmatpush1.bf16.msra.mxu0 %v1300_v11  ;;  %669 = vmatpush1.bf16.msra.mxu1 %v1351_v31  ;;  %v47_v3 = vld [vmem:[%s1659_s0 + $0x28] sm:$0xff]  ;;  %v1403_v5 = vld [vmem:[#allocation2 + $0xd4] ss:$8 sps:$4 sm:$0xff]   ;;  %v1405_v9 = vld [vmem:[#allocation2 + $0xd0] ss:$8 sps:$4 sm:$0xff]   ;;  %vm1088_vm3 = vcmask 80896  }
  0x2a   :  { %713 = vmatprep.subr.bf16.mxu0 %v1301_v14  ;;  %670 = vmatprep.subr.bf16.mxu1 %v1355_v32  ;;  %v54_v6 = vpack.c.bf16 %v47_v3, %v47_v3  ;;  %v1354_v7 = vld [vmem:[#allocation2 + $0x224] ss:$8 sps:$4 sm:$0xff]   ;;  %v1352_v8 = vld [vmem:[#allocation2 + $0x220] ss:$8 sps:$4 sm:$0xff]   ;;  %v1360_v11 = vld [vmem:[#allocation2 + $0x234] ss:$8 sps:$4 sm:$0xff]  }
  0x2b   :  { %692 = vmatprep.mubr.bf16.mxu1 %v50_v0  ;;  %v1409_v10 = vld [vmem:[#allocation2 + $0xe4] ss:$8 sps:$4 sm:$0xff]   ;;  %v1358_v12 = vld [vmem:[#allocation2 + $0x230] ss:$8 sps:$4 sm:$0xff]   ;;  %v1411_v13 = vld [vmem:[#allocation2 + $0xe0] ss:$8 sps:$4 sm:$0xff]  }
  0x2c   :  { %v1415_v14 = vld [vmem:[#allocation2 + $0xf4] ss:$8 sps:$4 sm:$0xff]   ;;  %v1366_v15 = vld [vmem:[#allocation2 + $0x244] ss:$8 sps:$4 sm:$0xff]   ;;  %v1417_v16 = vld [vmem:[#allocation2 + $0xf0] ss:$8 sps:$4 sm:$0xff]  }
  0x2d   :  { %714 = vmatpush1.bf16.msra.mxu0 %v1303_v17  ;;  %671 = vmatpush1.bf16.msra.mxu1 %v1357_v35  ;;  %v42_v17 = vld [vmem:[%s1659_s0] sm:$0xff]  ;;  %v1372_v20 = vld [vmem:[#allocation2 + $0x254] ss:$8 sps:$4 sm:$0xff]   ;;  %v1382_v32 = vld [vmem:[#allocation2 + $0x270] ss:$8 sps:$4 sm:$0xff]  }
  0x2e   :  { %715 = vmatprep.subr.bf16.mxu0 %v1304_v18  ;;  %672 = vmatprep.subr.bf16.mxu1 %v1361_v36  ;;  %v1364_v18 = vld [vmem:[#allocation2 + $0x240] ss:$8 sps:$4 sm:$0xff]   ;;  %v1426_v19 = vld [vmem:[#allocation2 + $0x304] ss:$8 sps:$4 sm:$0xff]   ;;  %v49_v22 = vpack.c.bf16 %v42_v17, %v42_v17  ;;  %v48_v27 = vld [vmem:[%s1659_s0 + $0x30] sm:$0xff] }
  0x2f   :  { %v1424_v21 = vld [vmem:[#allocation2 + $0x300] ss:$8 sps:$4 sm:$0xff]   ;;  %v1378_v25 = vld [vmem:[#allocation2 + $0x264] ss:$8 sps:$4 sm:$0xff]   ;;  %v1436_v55 = vld [vmem:[%s1662_s3 + $0x58] sm:$0xff]  }
  0x30   :  { %v1376_v28 = vld [vmem:[#allocation2 + $0x260] ss:$8 sps:$4 sm:$0xff]   ;;  %v1442_v61 = vld [vmem:[%s1662_s3 + $0x70] sm:$0xff]   ;;  %v1445_v0 = vld [vmem:[%s1662_s3 + $0x38] sm:$0xff]  }
  0x31   :  { %716 = vmatpush1.bf16.msra.mxu0 %v1306_v23  ;;  %673 = vmatpush1.bf16.msra.mxu1 %v1363_v39  ;;  %v1370_v23 = vld [vmem:[#allocation2 + $0x250] ss:$8 sps:$4 sm:$0xff]   ;;  %v1431_v31 = vld [vmem:[%s1662_s3] sm:$0xff]   ;;  %v1433_v35 = vld [vmem:[%s1662_s3 + $0x8] sm:$0xff]  }
  0x32   :  { %717 = vmatprep.subr.bf16.mxu0 %v1307_v24  ;;  %674 = vmatprep.subr.bf16.mxu1 %v1367_v40  ;;  %v1430_v24 = vld [vmem:[%s1662_s3 + $0x40] sm:$0xff]   ;;  %v1435_v39 = vld [vmem:[%s1662_s3 + $0x10] sm:$0xff]  }
  0x33   :  { %v1388_v36 = vld [vmem:[#allocation2 + $0x280] ss:$8 sps:$4 sm:$0xff]   ;;  %v1394_v40 = vld [vmem:[#allocation2 + $0x290] ss:$8 sps:$4 sm:$0xff]  }
  0x35   :  { %718 = vmatpush1.bf16.msra.mxu0 %v1309_v26  ;;  %675 = vmatpush1.bf16.msra.mxu1 %v1369_v43  ;;  %v1501_v26 = vmov 0   ;;  %v1408_v43 = vld [vmem:[#allocation2 + $0x2b4] ss:$8 sps:$4 sm:$0xff]  }
  0x36   :  { %719 = vmatprep.subr.bf16.mxu0 %v1310_v29  ;;  %676 = vmatprep.subr.bf16.mxu1 %v1373_v44  ;;  %v1384_v29 = vld [vmem:[#allocation2 + $0x274] ss:$8 sps:$4 sm:$0xff]   ;;  %v1406_v44 = vld [vmem:[#allocation2 + $0x2b0] ss:$8 sps:$4 sm:$0xff]  }
  0x39   :  { %720 = vmatpush1.bf16.msra.mxu0 %v1312_v30  ;;  %677 = vmatpush1.bf16.msra.mxu1 %v1375_v47  ;;  %v55_v30 = vpack.c.bf16 %v48_v27, %v48_v27  ;;  %v1420_v47 = vld [vmem:[#allocation2 + $0x2d4] ss:$8 sps:$4 sm:$0xff]  }
  0x3a   :  { %721 = vmatprep.subr.bf16.mxu0 %v1313_v33  ;;  %678 = vmatprep.subr.bf16.mxu1 %v1379_v48  ;;  %v1432_v33 = vld [vmem:[%s1662_s3 + $0x48] sm:$0xff]   ;;  %v1418_v48 = vld [vmem:[#allocation2 + $0x2d0] ss:$8 sps:$4 sm:$0xff]  }
  0x3d   :  { %722 = vmatpush1.bf16.msra.mxu0 %v1315_v34  ;;  %679 = vmatpush1.bf16.msra.mxu1 %v1381_v51  ;;  %v1390_v34 = vld [vmem:[#allocation2 + $0x284] ss:$8 sps:$4 sm:$0xff]   ;;  %v1429_v51 = vld [vmem:[#allocation2 + $0x2f4] ss:$8 sps:$4 sm:$0xff]  }
  0x3e   :  { %723 = vmatprep.subr.bf16.mxu0 %v1316_v37  ;;  %680 = vmatprep.subr.bf16.mxu1 %v1385_v52  ;;  %v1434_v37 = vld [vmem:[%s1662_s3 + $0x50] sm:$0xff]  }
  0x3f   :  { %v1427_v52 = vld [vmem:[#allocation2 + $0x2f0] ss:$8 sps:$4 sm:$0xff]  }
  0x41   :  { %724 = vmatpush1.bf16.msra.mxu0 %v1318_v38  ;;  %681 = vmatpush1.bf16.msra.mxu1 %v1387_v56  ;;  %v1396_v38 = vld [vmem:[#allocation2 + $0x294] ss:$8 sps:$4 sm:$0xff]  }
  0x42   :  { %725 = vmatprep.subr.bf16.mxu0 %v1319_v41  ;;  %682 = vmatprep.subr.bf16.mxu1 %v1391_v57  ;;  %v1402_v41 = vld [vmem:[#allocation2 + $0x2a4] ss:$8 sps:$4 sm:$0xff]   ;;  %v1437_v56 = vld [vmem:[%s1662_s3 + $0x18] sm:$0xff]  }
  0x43   :  { %v1438_v57 = vld [vmem:[%s1662_s3 + $0x60] sm:$0xff]  }
  0x45   :  { %726 = vmatpush1.bf16.msra.mxu0 %v1321_v42  ;;  %683 = vmatpush1.bf16.msra.mxu1 %v1393_v60  ;;  %v1400_v42 = vld [vmem:[#allocation2 + $0x2a0] ss:$8 sps:$4 sm:$0xff]  }
  0x46   :  { %727 = vmatprep.subr.bf16.mxu0 %v1322_v45  ;;  %684 = vmatprep.subr.bf16.mxu1 %v1397_v63  ;;  %v1414_v45 = vld [vmem:[#allocation2 + $0x2c4] ss:$8 sps:$4 sm:$0xff]   ;;  %v1444_v63 = vld [vmem:[%s1662_s3 + $0x78] sm:$0xff]  }
  0x47   :  { %v1441_v60 = vld [vmem:[%s1662_s3 + $0x28] sm:$0xff]  }
  0x49   :  { %728 = vmatpush1.bf16.msra.mxu0 %v1324_v46  ;;  %685 = vmatpush1.bf16.msra.mxu1 %v1399_v2  ;;  %v1412_v46 = vld [vmem:[#allocation2 + $0x2c0] ss:$8 sps:$4 sm:$0xff]  }
  0x4a   :  { %729 = vmatprep.subr.bf16.mxu0 %v1328_v49  ;;  %686 = vmatprep.subr.bf16.mxu1 %v1403_v5  ;;  %v1423_v49 = vld [vmem:[#allocation2 + $0x2e4] ss:$8 sps:$4 sm:$0xff]  }
  0x4d   :  { %730 = vmatpush1.bf16.msra.mxu0 %v1330_v50  ;;  %687 = vmatpush1.bf16.msra.mxu1 %v1405_v9  ;;  %v1421_v50 = vld [vmem:[#allocation2 + $0x2e0] ss:$8 sps:$4 sm:$0xff]  }
  0x4e   :  { %731 = vmatprep.subr.bf16.mxu0 %v1334_v53  ;;  %688 = vmatprep.subr.bf16.mxu1 %v1409_v10  ;;  %v46_v53 = vld [vmem:[%s1659_s0 + $0x20] sm:$0xff]  ;;  %v156_v10 = vlaneseq }
  0x51   :  { %732 = vmatpush1.bf16.msra.mxu0 %v1336_v54  ;;  %689 = vmatpush1.bf16.msra.mxu1 %v1411_v13  ;;  %v53_v54 = vpack.c.bf16 %v46_v53, %v46_v53  ;;  %v154_v13 = vld [vmem:[%s1661_s2] sm:$0x3] }
  0x52   :  { %742 = vmatprep.subr.bf16.mxu0 %v1342_v58  ;;  %690 = vmatprep.subr.bf16.mxu1 %v1415_v14  ;;  %v1439_v58 = vld [vmem:[%s1662_s3 + $0x20] sm:$0xff]  }
  0x54   :  { %734 = vmatmul.mubr.bf16.vlgmr.msra.gmra.mrb[0].mxu0 %v51_v59  ;;  %v1440_v59 = vld [vmem:[%s1662_s3 + $0x68] sm:$0xff]  }
  0x55   :  { %743 = vmatpush1.bf16.msra.mxu0 %v1340_v62  ;;  %774 = vmatprep.mubr.bf16.mxu0 %v54_v6  ;;  %v1443_v62 = vld [vmem:[%s1662_s3 + $0x30] sm:$0xff]  }
  0x56   :  { %744 = vmatprep.subr.bf16.mxu0 %v1348_v1  ;;  %691 = vmatpush1.bf16.msra.mxu1 %v1417_v16  ;;  %v1502_v1 = vmov 0.0  }
  0x57   :  { %783 = vmatprep.subr.bf16.mxu1 %v1426_v19 }
  0x59   :  { %745 = vmatpush1.bf16.msra.mxu0 %v1346_v4  ;;  %693 = vmatmul.mubr.bf16.vlgmr.msra.gmra.mrb[0].mxu1 %v49_v22 }
  0x5a   :  { %746 = vmatprep.subr.bf16.mxu0 %v1354_v7  ;;  %784 = vmatpush1.bf16.msra.mxu1 %v1424_v21 }
  0x5b   :  { %815 = vmatprep.mubr.bf16.mxu1 %v1501_v26  ;;  %1227 = vmatprep.subr.bf16.mxu1 %v1430_v24 }
  0x5d   :  { %747 = vmatpush1.bf16.msra.mxu0 %v1352_v8 }
  0x5e   :  { %748 = vmatprep.subr.bf16.mxu0 %v1360_v11  ;;  %v157_v11 = vshrl.u32 %v156_v10, 7 }
  0x60   :  { %v162_v14 = vsub.s32 1, %v157_v11 }
  0x61   :  { %749 = vmatpush1.bf16.msra.mxu0 %v1358_v12  ;;  %1203 = vmatmul.mubr.msk.bf16.vlgmr.msra.gmra.mrb[4].mxu1 %vm656_vm0, %v55_v30  ;;  %v158_v12 = vsub.s32 0, %v157_v11  ;;  %v1446_v30 = vld [vmem:[%s1664_s5] sm:$0xff]  }
  0x62   :  { %750 = vmatprep.subr.bf16.mxu0 %v1366_v15  ;;  %1228 = vmatpush3.bf16.msra.mxu1 %v1431_v31  ;;  %v163_v16 = vrot.slane %v154_v13, %v162_v14 }
  0x63   :  { %1229 = vmatprep.subr.bf16.mxu1 %v1432_v33  ;;  %v159_v15 = vrot.slane %v154_v13, %v158_v12  ;;  %v1448_v33 = vld [vmem:[%s1664_s5 + $0x10] sm:$0xff]  }
  0x65   :  { %751 = vmatpush1.bf16.msra.mxu0 %v1364_v18 }
  0x66   :  { %752 = vmatprep.subr.bf16.mxu0 %v1372_v20  ;;  %1230 = vmatpush3.bf16.msra.mxu1 %v1433_v35 }
  0x67   :  { %1231 = vmatprep.subr.bf16.mxu1 %v1434_v37 }
  0x69   :  { %753 = vmatpush1.bf16.msra.mxu0 %v1370_v23 }
  0x6a   :  { %754 = vmatprep.subr.bf16.mxu0 %v1378_v25  ;;  %1232 = vmatpush3.bf16.msra.mxu1 %v1435_v39 }
  0x6b   :  { %1233 = vmatprep.subr.bf16.mxu1 %v1436_v55 }
  0x6d   :  { %755 = vmatpush1.bf16.msra.mxu0 %v1376_v28 }
  0x6e   :  { %756 = vmatprep.subr.bf16.mxu0 %v1384_v29  ;;  %1234 = vmatpush3.bf16.msra.mxu1 %v1437_v56 }
  0x6f   :  { %1235 = vmatprep.subr.bf16.mxu1 %v1438_v57 }
  0x71   :  { %757 = vmatpush1.bf16.msra.mxu0 %v1382_v32  ;;  %v1447_v32 = vld [vmem:[%s1664_s5 + $0x8] sm:$0xff]  }
  0x72   :  { %758 = vmatprep.subr.bf16.mxu0 %v1390_v34  ;;  %1236 = vmatpush3.bf16.msra.mxu1 %v1439_v58  ;;  %v1449_v34 = vld [vmem:[%s1664_s5 + $0x18] sm:$0xff]   ;;  %s1504_s5 = smov [#allocation5]  }
  0x73   :  { %1237 = vmatprep.subr.bf16.mxu1 %v1440_v59  ;;  %s1096_s0 = sshll.u32 %s1504_s5, 4  ;;  %s1097_s0 = int_to_ptr.vmem [resolvable:$true] %s1096_s0 }
  0x74   :  { %p1477_p9 = scmp.lt.s32.totalorder %s1097_s0, %s1097_s0 }
  0x75   :  { %759 = vmatpush1.bf16.msra.mxu0 %v1388_v36  ;;  %v1204_v36 = vld [vmem:[%s1663_s4] ss:$0 sm:$0xff]  ;;  %s1472_s4 = scalar_lea.vmem %s1097_s0, 128 }
  0x76   :  { %760 = vmatprep.subr.bf16.mxu0 %v1396_v38  ;;  %1238 = vmatpush3.bf16.msra.mxu1 %v1441_v60  ;;  %p1473_p8 = scmp.ne.s32.totalorder %s1097_s0, %s1472_s4  ;;  %p1478_p10 = scmp.lt.s32.totalorder %s1472_s4, %s1472_s4 }
  0x77   :  { %1239 = vmatprep.subr.bf16.mxu1 %v1442_v61 }
  0x78   :  { %p1479_p11 = por %p1478_p10, %p1477_p9 }
  0x79   :  { %761 = vmatpush1.bf16.msra.mxu0 %v1394_v40 }
  0x7a   :  { %762 = vmatprep.subr.bf16.mxu0 %v1402_v41  ;;  %1240 = vmatpush3.bf16.msra.mxu1 %v1443_v62  ;;  %p1480_p12 = pnand %p1479_p11, %p1473_p8 }
  0x7b   :  { %1241 = vmatprep.subr.bf16.mxu1 %v1444_v63 }
  0x7d   :  { %763 = vmatpush1.bf16.msra.mxu0 %v1400_v42 }
  0x7e   :  { %764 = vmatprep.subr.bf16.mxu0 %v1408_v43  ;;  %1242 = vmatpush3.bf16.msra.mxu1 %v1445_v0 }
  0x7f   :  { %1254 = vmatprep.subr.bf16.mxu1 %v1502_v1 }
  0x81   :  { %765 = vmatpush1.bf16.msra.mxu0 %v1406_v44  ;;  %v1221_v44 = vld [vmem:[%s1665_s6] ss:$0 sm:$0xff] }
  0x82   :  { %766 = vmatprep.subr.bf16.mxu0 %v1414_v45 }
  0x85   :  { %767 = vmatpush1.bf16.msra.mxu0 %v1412_v46 }
  0x86   :  { %768 = vmatprep.subr.bf16.mxu0 %v1420_v47 }
  0x89   :  { %769 = vmatpush1.bf16.msra.mxu0 %v1418_v48 }
  0x8a   :  { %770 = vmatprep.subr.bf16.mxu0 %v1423_v49 }
  0x8d   :  { %771 = vmatpush1.bf16.msra.mxu0 %v1421_v50 }
  0x8e   :  { %772 = vmatprep.subr.bf16.mxu0 %v1429_v51 }
  0x91   :  { %773 = vmatpush1.bf16.msra.mxu0 %v1427_v52 }
  0x94   :  { %775 = vmatmul.mubr.bf16.vlgmr.msra.gmra.mrb[0].mxu0 %v53_v54 }
 0x12c   :  { %v694_v2 = vpop.f32.mrb[0].mxu1 }
 0x12d   :  { %v696_v3 = vpop.f32.mrb[1].mxu1  ;;  %v695_v17 = vadd.f32 %v694_v2, %v159_v15 }
 0x12e   :  { %v698_v4 = vpop.f32.mrb[2].mxu1  ;;  %v697_v18 = vadd.f32 %v696_v3, %v163_v16 }
 0x12f   :  { %v699_v5 = vpop.f32.mrb[3].mxu1 }
 0x134   :  { %v817_v6 = vpop.f32.mrb[4].mxu1 }
 0x135   :  { %v819_v7 = vpop.f32.mrb[5].mxu1 }
 0x136   :  { %v821_v8 = vpop.f32.mrb[6].mxu1 }
 0x137   :  { %v822_v9 = vpop.f32.mrb[7].mxu1 }
 0x167   :  { %v776_v19 = vpop.f32.mrb[0].mxu0 }
 0x168   :  { %v1267_v20 = vadd.f32 %v776_v19, %v695_v17  ;;  %v778_v21 = vpop.f32.mrb[1].mxu0 }
 0x169   :  { %v1270_v22 = vadd.f32 %v778_v21, %v697_v18  ;;  %v780_v23 = vpop.f32.mrb[2].mxu0 }
 0x16a   :  { %v1268_v24 = vadd.f32 %v1267_v20, %v817_v6  ;;  %v781_v25 = vpop.f32.mrb[3].mxu0 }
 0x16b   :  { %v1271_v26 = vadd.f32 %v1270_v22, %v819_v7 }
 0x16c   :  { %v824_v27 = vmax.f32 %v1268_v24, 0.0 }
 0x16d   :  { %v825_v28 = vmax.f32 %v1271_v26, 0.0 }
 0x16e   :  { %v826_v31 = vpack.c.bf16 %v824_v27, %v824_v27 }
 0x16f   :  { %v827_v29 = vpack.c.bf16 %v825_v28, %v825_v28 }
 0x171   :  { %995 = vmatprep.mubr.bf16.mxu1 %v827_v29 }
 0x172   :  { %996 = vmatmul.mubr.bf16.vlgmr.msra.gmra.mrb[8].mxu1 %v826_v31 }
 0x173   :  { %1255 = vmatpush3.bf16.msra.mxu1 %v1446_v30  ;;  %1262 = vmatprep.mubr.msk.bf16.mxu1 %vm1503_vm1, %v1502_v1 }
 0x174   :  { %1256 = vmatprep.subr.bf16.mxu1 %v1502_v1 }
 0x177   :  { %1257 = vmatpush3.bf16.msra.mxu1 %v1447_v32 }
 0x178   :  { %1258 = vmatprep.subr.bf16.mxu1 %v1502_v1 }
 0x17b   :  { %1259 = vmatpush3.bf16.msra.mxu1 %v1448_v33 }
 0x17c   :  { %1260 = vmatprep.subr.bf16.mxu1 %v1502_v1 }
 0x17f   :  { %1261 = vmatpush3.bf16.msra.mxu1 %v1449_v34 }
 0x245   :  { %v1243_v35 = vpop.f32.mrb[8].mxu1 }
 0x246   :  { %v1244_v37 = vpop.f32.mrb[9].mxu1 }
 0x247   :  { %v1245_v38 = vadd.f32 %v1244_v37, %v1243_v35  ;;  %v1246_v39 = vpop.f32.mrb[10].mxu1 }
 0x248   :  { %v1247_v40 = vpop.f32.mrb[11].mxu1 }
 0x249   :  { %v998_v41 = vadd.f32 %v1245_v38, %v1204_v36 }
 0x24b   :  { %v1003_v42 = vmax.f32 %v998_v41, 0.0 }
 0x24d   :  { %v1004_v43 = vpack.c.bf16 %v1003_v42, %v1003_v42 }
 0x24f   :  { %1263 = vmatmul.mubr.msk.bf16.vlgmr.msra.gmra.mrb[12].mxu1 %vm1044_vm2, %v1004_v43 }
 0x322   :  { %v1082_v45 = vpop.f32.mrb[12].mxu1 }
 0x323   :  { %v1083_v46 = vadd.f32 %v1221_v44, %v1082_v45  ;;  %v1264_v47 = vpop.f32.mrb[13].mxu1 }
 0x324   :  { %v1085_v48 = vpop.f32.mrb[14].mxu1 }
 0x325   :  { %v1265_v49 = vpop.f32.mrb[15].mxu1  ;;  %1089 = vst.msk [vmem:[#allocation5] sm:$0xff] %vm1088_vm3, %v1083_v46 }
 0x326   :  { %1483 = shalt.err (!%p1480_p12)
}
 0x327   :  { %s1484_s6 = scalar_lea.hbm %s1666_s7, 128 }
 0x328   :  { %p1485_p13 = scmp.ne.s32.totalorder %s1666_s7, %s1484_s6  ;;  %p1488_p0 = scmp.lt.u32.totalorder %s1484_s6, %s1666_s7 }
 0x32a   :  { %p1490_p1 = pnand %p1488_p0, %p1485_p13 }
 0x32c   :  { %1493 = shalt.err (!%p1490_p1)
}
 0x32d   :  { %1099 = dma.vmem_to_hbm [thread:$0]  %s1097_s0, 128, %s1666_s7, [#allocation4]  }
 0x32e   :  { %1496 = dma.done.wait [#allocation4], 128  }
 0x32f   :  { %1497 = vsyncadd [#allocation4], 4294967168 }
 0x330   :  { %1103 = vsyncpa [#allocation3], 1 }
 0x331   :  { %1104 = vsyncpa [#allocation4], 1 }

</bundles_post_ra>
